<compile_context>
chip_gen: v5e
topology: v5e:2x2
jax: 0.10.0
libtpu: 0.0.40
codegen_flags: <defaults>
</compile_context>

<pallas_src>
import functools

import jax
import jax.numpy as jnp
from jax.experimental import pallas as pl
from jax.experimental.pallas import tpu as pltpu

SUBLANE = 8        # f32 sublane tile (second-to-last dim)
MAX_TILE_B = 1024  # batch tile cap (MXU M dimension / rows per grid step)


def _round_up(n, m):
    return ((n + m - 1) // m) * m


def dqn_kernel(x_ref, w1_ref, b1_ref, w2_ref, b2_ref, w3_ref, b3_ref, o_ref):
    # One batch tile per grid step.  Weights are bf16 and VMEM-resident across
    # the whole grid (constant index_map); matmuls run bf16 x bf16 -> f32
    # accumulation on the MXU, bias-add / ReLU stay f32 on the VPU.
    x = x_ref[...].astype(jnp.bfloat16)

    h1 = jnp.dot(x, w1_ref[...], preferred_element_type=jnp.float32) + b1_ref[...]
    h1 = jnp.maximum(h1, 0.0)

    h2 = jnp.dot(h1.astype(jnp.bfloat16), w2_ref[...],
                 preferred_element_type=jnp.float32) + b2_ref[...]
    h2 = jnp.maximum(h2, 0.0)

    out = jnp.dot(h2.astype(jnp.bfloat16), w3_ref[...],
                  preferred_element_type=jnp.float32) + b3_ref[...]
    # Narrow (output_dim-wide) store: masked vst in VMEM (tile_b/8 stores per
    # tile, negligible), but the HBM writeback is 16x smaller than the old
    # 128-lane-padded version and fully contiguous.
    o_ref[...] = out.astype(o_ref.dtype)


def _choose_tile_b(batch):
    """Largest batch tile <= MAX_TILE_B that still yields >=2 grid steps
    whenever the batch spans more than one 8-row sublane tile (keeps both v7x
    TensorCores busy; amortizes per-step overhead on all generations)."""
    half = _round_up(max(1, (batch + 1) // 2), SUBLANE)
    return max(SUBLANE, min(MAX_TILE_B, half))


@jax.jit
def dqn_forward(x, kparams):
    """x: (batch, input_dim) f32.  kparams: output of prepare_params()."""
    (w1, b1), (w2, b2), (w3, b3) = kparams
    batch, input_dim = x.shape
    hidden = w1.shape[1]
    output_dim = w3.shape[1]

    tile_b = _choose_tile_b(batch)
    b_pad = _round_up(batch, tile_b)
    if b_pad != batch:
        x = jnp.pad(x, ((0, b_pad - batch), (0, 0)))

    grid = (b_pad // tile_b,)

    flops = 2 * b_pad * (input_dim * hidden + hidden * hidden + hidden * output_dim)
    bytes_accessed = (
        b_pad * input_dim * 4                                                  # x (f32)
        + (input_dim * hidden + hidden * hidden + hidden * output_dim) * 2     # bf16 weights
        + (2 * hidden + output_dim) * 4                                        # f32 biases
        + b_pad * output_dim * 4                                               # out (f32)
    )

    out = pl.pallas_call(
        dqn_kernel,
        out_shape=jax.ShapeDtypeStruct((b_pad, output_dim), jnp.float32),
        grid=grid,
        in_specs=[
            # activations: one batch tile per grid step (double-buffered)
            pl.BlockSpec((tile_b, input_dim), lambda i: (i, 0)),
            # weights / biases: constant index_map -> DMA'd once, VMEM-resident
            pl.BlockSpec((input_dim, hidden), lambda i: (0, 0)),
            pl.BlockSpec((1, hidden), lambda i: (0, 0)),
            pl.BlockSpec((hidden, hidden), lambda i: (0, 0)),
            pl.BlockSpec((1, hidden), lambda i: (0, 0)),
            pl.BlockSpec((hidden, output_dim), lambda i: (0, 0)),
            pl.BlockSpec((1, output_dim), lambda i: (0, 0)),
        ],
        out_specs=pl.BlockSpec((tile_b, output_dim), lambda i: (i, 0)),
        compiler_params=pltpu.CompilerParams(
            dimension_semantics=("parallel",),  # v7x: shard batch tiles across 2 TCs
        ),
        cost_estimate=pl.CostEstimate(
            flops=flops, transcendentals=0, bytes_accessed=bytes_accessed),
    )(x, w1, b1, w2, b2, w3, b3)

    # No lane padding to strip anymore; only remove the batch padding (cheap,
    # contiguous prefix) and only when padding was actually added.
    if b_pad != batch:
        out = out[:batch]
    return out


def init_linear_params(key, fan_in, fan_out):
    """torch.nn.Linear-style init (uniform +/- 1/sqrt(fan_in)); weight stored
    pre-transposed as (fan_in, fan_out) so the kernel computes y = x @ W + b."""
    kw, kb = jax.random.split(key)
    bound = 1.0 / jnp.sqrt(jnp.float32(fan_in))
    w = jax.random.uniform(kw, (fan_in, fan_out), jnp.float32, -bound, bound)
    b = jax.random.uniform(kb, (1, fan_out), jnp.float32, -bound, bound)
    return w, b


def prepare_params(params):
    """One-time conversion to kernel-ready persistent device arrays:
    bf16 weights (halves weight DMA, native MXU path), f32 biases."""
    (w1, b1), (w2, b2), (w3, b3) = params
    return (
        (w1.astype(jnp.bfloat16), b1),
        (w2.astype(jnp.bfloat16), b2),
        (w3.astype(jnp.bfloat16), b3),
    )


def dqn_reference(x, kparams):
    """Pure-JAX reference mirroring the kernel's dtype behaviour."""
    (w1, b1), (w2, b2), (w3, b3) = kparams
    h1 = jnp.maximum(
        jnp.dot(x.astype(jnp.bfloat16), w1, preferred_element_type=jnp.float32) + b1, 0.0)
    h2 = jnp.maximum(
        jnp.dot(h1.astype(jnp.bfloat16), w2, preferred_element_type=jnp.float32) + b2, 0.0)
    return jnp.dot(h2.astype(jnp.bfloat16), w3, preferred_element_type=jnp.float32) + b3


if __name__ == "__main__":
    batch = 2
    input_dim = 16
    hidden = 256
    output_dim = 8

    key = jax.random.PRNGKey(0)
    kx, k1, k2, k3, kbig = jax.random.split(key, 5)

    x = jax.random.normal(kx, (batch, input_dim), jnp.float32)
    params = (
        init_linear_params(k1, input_dim, hidden),
        init_linear_params(k2, hidden, hidden),
        init_linear_params(k3, hidden, output_dim),
    )
    kparams = prepare_params(params)  # persistent bf16 params, reused per call

    # Small batch (rounds up to one 8-row tile, single grid step).
    out = jax.block_until_ready(dqn_forward(x, kparams))
    ref = dqn_reference(x, kparams)
    assert out.shape == (batch, output_dim)
    assert jnp.allclose(out, ref, atol=1e-3, rtol=1e-3)

    # Larger batch exercising the multi-step grid + batch padding path.
    big_batch = 300
    xb = jax.random.normal(kbig, (big_batch, input_dim), jnp.float32)
    out_b = jax.block_until_ready(dqn_forward(xb, kparams))
    ref_b = dqn_reference(xb, kparams)
    assert out_b.shape == (big_batch, output_dim)
    assert jnp.allclose(out_b, ref_b, atol=1e-3, rtol=1e-3)

    print("KERNEL_OK")
</pallas_src>

<mosaic_0001>
module attributes {stable_mosaic.version = 11 : i64} {
  func.func @dqn_kernel(%arg0: i32, %arg1: memref<8x16xf32, #tpu.memory_space<vmem>>, %arg2: memref<16x256xbf16, #tpu.memory_space<vmem>>, %arg3: memref<1x256xf32, #tpu.memory_space<vmem>>, %arg4: memref<256x256xbf16, #tpu.memory_space<vmem>>, %arg5: memref<1x256xf32, #tpu.memory_space<vmem>>, %arg6: memref<256x8xbf16, #tpu.memory_space<vmem>>, %arg7: memref<1x8xf32, #tpu.memory_space<vmem>>, %arg8: memref<8x8xf32, #tpu.memory_space<vmem>>) attributes {dimension_semantics = [#tpu.dimension_semantics<parallel>], iteration_bounds = array<i64: 1>, scalar_prefetch = 0 : i64, scratch_operands = 0 : i64, tpu.core_type = #tpu.core_type<tc>, window_params = [{transform_indices = @transform_0, window_bounds = array<i64: 8, 16>}, {pipeline_mode = #tpu.pipeline_mode<synchronous>, transform_indices = @transform_1, window_bounds = array<i64: 16, 256>}, {pipeline_mode = #tpu.pipeline_mode<synchronous>, transform_indices = @transform_2, window_bounds = array<i64: 1, 256>}, {pipeline_mode = #tpu.pipeline_mode<synchronous>, transform_indices = @transform_3, window_bounds = array<i64: 256, 256>}, {pipeline_mode = #tpu.pipeline_mode<synchronous>, transform_indices = @transform_4, window_bounds = array<i64: 1, 256>}, {pipeline_mode = #tpu.pipeline_mode<synchronous>, transform_indices = @transform_5, window_bounds = array<i64: 256, 8>}, {pipeline_mode = #tpu.pipeline_mode<synchronous>, transform_indices = @transform_6, window_bounds = array<i64: 1, 8>}, {transform_indices = @transform_7, window_bounds = array<i64: 8, 8>}]} {
    %c0 = arith.constant 0 : index
    %c0_0 = arith.constant 0 : index
    %0 = vector.load %arg1[%c0, %c0_0] : memref<8x16xf32, #tpu.memory_space<vmem>>, vector<8x16xf32>
    %1 = arith.truncf %0 : vector<8x16xf32> to vector<8x16xbf16>
    %c0_1 = arith.constant 0 : index
    %c0_2 = arith.constant 0 : index
    %2 = vector.load %arg2[%c0_1, %c0_2] : memref<16x256xbf16, #tpu.memory_space<vmem>>, vector<16x256xbf16>
    %cst = arith.constant dense<0.000000e+00> : vector<8x256xf32>
    %3 = tpu.matmul %1, %2, %cst {dimension_numbers = #tpu.dot_dimension_numbers<[1], [0], [0], [1], [0, 0, 1, 1], [], []>} : vector<8x16xbf16>, vector<16x256xbf16>, vector<8x256xf32> -> vector<8x256xf32>
    %c0_3 = arith.constant 0 : index
    %c0_4 = arith.constant 0 : index
    %4 = vector.load %arg3[%c0_3, %c0_4] : memref<1x256xf32, #tpu.memory_space<vmem>>, vector<1x256xf32>
    %5 = vector.broadcast %4 : vector<1x256xf32> to vector<8x256xf32>
    %6 = arith.addf %3, %5 : vector<8x256xf32>
    %cst_5 = arith.constant 0.000000e+00 : f32
    %7 = vector.broadcast %cst_5 : f32 to vector<8x256xf32>
    %8 = arith.maximumf %6, %7 : vector<8x256xf32>
    %9 = arith.truncf %8 : vector<8x256xf32> to vector<8x256xbf16>
    %c0_6 = arith.constant 0 : index
    %c0_7 = arith.constant 0 : index
    %10 = vector.load %arg4[%c0_6, %c0_7] : memref<256x256xbf16, #tpu.memory_space<vmem>>, vector<256x256xbf16>
    %cst_8 = arith.constant dense<0.000000e+00> : vector<8x256xf32>
    %11 = tpu.matmul %9, %10, %cst_8 {dimension_numbers = #tpu.dot_dimension_numbers<[1], [0], [0], [1], [0, 0, 1, 1], [], []>} : vector<8x256xbf16>, vector<256x256xbf16>, vector<8x256xf32> -> vector<8x256xf32>
    %c0_9 = arith.constant 0 : index
    %c0_10 = arith.constant 0 : index
    %12 = vector.load %arg5[%c0_9, %c0_10] : memref<1x256xf32, #tpu.memory_space<vmem>>, vector<1x256xf32>
    %13 = vector.broadcast %12 : vector<1x256xf32> to vector<8x256xf32>
    %14 = arith.addf %11, %13 : vector<8x256xf32>
    %cst_11 = arith.constant 0.000000e+00 : f32
    %15 = vector.broadcast %cst_11 : f32 to vector<8x256xf32>
    %16 = arith.maximumf %14, %15 : vector<8x256xf32>
    %17 = arith.truncf %16 : vector<8x256xf32> to vector<8x256xbf16>
    %c0_12 = arith.constant 0 : index
    %c0_13 = arith.constant 0 : index
    %18 = vector.load %arg6[%c0_12, %c0_13] : memref<256x8xbf16, #tpu.memory_space<vmem>>, vector<256x8xbf16>
    %cst_14 = arith.constant dense<0.000000e+00> : vector<8x8xf32>
    %19 = tpu.matmul %17, %18, %cst_14 {dimension_numbers = #tpu.dot_dimension_numbers<[1], [0], [0], [1], [0, 0, 1, 1], [], []>} : vector<8x256xbf16>, vector<256x8xbf16>, vector<8x8xf32> -> vector<8x8xf32>
    %c0_15 = arith.constant 0 : index
    %c0_16 = arith.constant 0 : index
    %20 = vector.load %arg7[%c0_15, %c0_16] : memref<1x8xf32, #tpu.memory_space<vmem>>, vector<1x8xf32>
    %21 = vector.broadcast %20 : vector<1x8xf32> to vector<8x8xf32>
    %22 = arith.addf %19, %21 : vector<8x8xf32>
    %c0_17 = arith.constant 0 : index
    %c0_18 = arith.constant 0 : index
    %23 = vector.load %arg8[%c0_17, %c0_18] : memref<8x8xf32, #tpu.memory_space<vmem>>, vector<8x8xf32>
    tpu.vector_store %arg8[%c0_17, %c0_18], %22 {strides = array<i32>} : memref<8x8xf32, #tpu.memory_space<vmem>>, vector<8x8xf32>,
    return
  }
  func.func @transform_0(%arg0: i32) -> (i32, i32) {
    %c0_i32 = arith.constant 0 : i32
    %c0_i32_0 = arith.constant 0 : i32
    return %arg0, %c0_i32 : i32, i32
  }
  func.func @transform_1(%arg0: i32) -> (i32, i32) {
    %c0_i32 = arith.constant 0 : i32
    %c0_i32_0 = arith.constant 0 : i32
    %c0_i32_1 = arith.constant 0 : i32
    return %c0_i32, %c0_i32_0 : i32, i32
  }
  func.func @transform_2(%arg0: i32) -> (i32, i32) {
    %c0_i32 = arith.constant 0 : i32
    %c0_i32_0 = arith.constant 0 : i32
    %c0_i32_1 = arith.constant 0 : i32
    return %c0_i32, %c0_i32_0 : i32, i32
  }
  func.func @transform_3(%arg0: i32) -> (i32, i32) {
    %c0_i32 = arith.constant 0 : i32
    %c0_i32_0 = arith.constant 0 : i32
    %c0_i32_1 = arith.constant 0 : i32
    return %c0_i32, %c0_i32_0 : i32, i32
  }
  func.func @transform_4(%arg0: i32) -> (i32, i32) {
    %c0_i32 = arith.constant 0 : i32
    %c0_i32_0 = arith.constant 0 : i32
    %c0_i32_1 = arith.constant 0 : i32
    return %c0_i32, %c0_i32_0 : i32, i32
  }
  func.func @transform_5(%arg0: i32) -> (i32, i32) {
    %c0_i32 = arith.constant 0 : i32
    %c0_i32_0 = arith.constant 0 : i32
    %c0_i32_1 = arith.constant 0 : i32
    return %c0_i32, %c0_i32_0 : i32, i32
  }
  func.func @transform_6(%arg0: i32) -> (i32, i32) {
    %c0_i32 = arith.constant 0 : i32
    %c0_i32_0 = arith.constant 0 : i32
    %c0_i32_1 = arith.constant 0 : i32
    return %c0_i32, %c0_i32_0 : i32, i32
  }
  func.func @transform_7(%arg0: i32) -> (i32, i32) {
    %c0_i32 = arith.constant 0 : i32
    %c0_i32_0 = arith.constant 0 : i32
    return %arg0, %c0_i32 : i32, i32
  }
}

</mosaic_0001>

<bundles_post_ra>
// kernel: dqn_forward.1
= control target key start
LH: loop header
LB: loop body
LE: loop exit
PB: predicated region body
PF: predicated region fallthrough
CT: control target
= control target key end

     0   :  { %12 = vsyncpa [#allocation3], 0  ;;  %s798_s27 = smov [#allocation2]   ;;  %s799_s29 = smov 128   ;;  %s921_s0 = inlined_call_operand.vmem [shape: f32[8,16], index: 0, kind: input, shape index: {}]   ;;  %s922_s1 = inlined_call_operand.vmem [shape: bf16[16,256], index: 1, kind: input, shape index: {}]   ;;  %s923_s2 = inlined_call_operand.vmem [shape: f32[1,256], index: 2, kind: input, shape index: {}]   ;;  %s924_s3 = inlined_call_operand.hbm [shape: bf16[256,256], index: 3, kind: input, shape index: {}]   ;;  %s925_s4 = inlined_call_operand.vmem [shape: f32[1,256], index: 4, kind: input, shape index: {}]   ;;  %s926_s5 = inlined_call_operand.vmem [shape: bf16[256,8], index: 5, kind: input, shape index: {}]   ;;  %s927_s6 = inlined_call_operand.vmem [shape: f32[1,8], index: 6, kind: input, shape index: {}]   ;;  %s928_s7 = inlined_call_operand.vmem [shape: f32[8,8], index: 7, kind: output, shape index: {}]  }
   0x1   :  { %s23_s26 = sshll.u32 %s924_s3, 4  ;;  %s25_s28 = sshll.u32 %s798_s27, 4  ;;  %s24_s26 = int_to_ptr.hbm [resolvable:$true] %s23_s26  ;;  %s26_s28 = int_to_ptr.vmem [resolvable:$true] %s25_s28 }
   0x2   :  { %s800_s30 = smov 8  }
   0x3   :  { %31 = dma.hbm_to_vmem [thread:$0]  %s24_s26, 4096, %s26_s28, [#allocation3], %s799_s29, %s799_s29, %s800_s30  }
   0x4   :  { %796 = dma.done.wait [#allocation3], 4096  }
   0x5   :  { %797 = vsyncadd [#allocation3], 4294963200  ;;  %v518_v0 = vld [vmem:[%s922_s1] sm:$0xf]  ;;  %v719_v1 = vld [vmem:[%s922_s1 + $0x4] sm:$0xf0] }
   0x6   :  { %v718_v2 = vld [vmem:[%s922_s1 + $0x4] sm:$0xf]  ;;  %v519_v3 = vor.u32 %v719_v1, %v518_v0  ;;  %v520_v4 = vld [vmem:[%s922_s1 + $0x8] sm:$0xf0]  ;;  %vm63_vm0 = vcmask 130048   ;;  %vm509_vm1 = vcmask 64512  }
   0x7   :  { %v43_v5 = vld [vmem:[%s921_s0] sm:$0xff]  ;;  %v584_v6 = vld [vmem:[#allocation2 + $0x70] sm:$0xf]  ;;  %v523_v7 = vor.u32 %v718_v2, %v520_v4  ;;  %v735_v9 = vld [vmem:[#allocation2 + $0x74] sm:$0xf0] }
   0x8   :  { %v44_v8 = vpack.c.bf16 %v43_v5, %v43_v5  ;;  %v648_v10 = vld [vmem:[#allocation2 + $0xf0] sm:$0xf]  ;;  %v751_v11 = vld [vmem:[#allocation2 + $0xf4] sm:$0xf0]  ;;  %74 = vmatpush.bf16.msra.mxu0 %v519_v3  ;;  %v585_v12 = vor.u32 %v735_v9, %v584_v6  ;;  %v734_v14 = vld [vmem:[#allocation2 + $0x74] sm:$0xf] }
   0x9   :  { %v649_v13 = vor.u32 %v751_v11, %v648_v10  ;;  %v586_v15 = vld [vmem:[#allocation2 + $0x78] sm:$0xf0]  ;;  %v750_v16 = vld [vmem:[#allocation2 + $0xf4] sm:$0xf]  ;;  %87 = vmatpush.bf16.msra.mxu1 %v523_v7  ;;  %v576_v19 = vld [vmem:[#allocation2 + $0x60] sm:$0xf] }
   0xa   :  { %v589_v17 = vor.u32 %v734_v14, %v586_v15  ;;  %v650_v18 = vld [vmem:[#allocation2 + $0xf8] sm:$0xf0]  ;;  %v733_v20 = vld [vmem:[#allocation2 + $0x64] sm:$0xf0]  ;;  %295 = vmatpush.bf16.msra.mxu2 %v585_v12  ;;  %v640_v23 = vld [vmem:[#allocation2 + $0xe0] sm:$0xf] }
   0xb   :  { %308 = vmatpush.bf16.msra.mxu3 %v649_v13  ;;  %v653_v21 = vor.u32 %v750_v16, %v650_v18  ;;  %v577_v22 = vor.u32 %v733_v20, %v576_v19  ;;  %v749_v24 = vld [vmem:[#allocation2 + $0xe4] sm:$0xf0]  ;;  %v732_v25 = vld [vmem:[#allocation2 + $0x64] sm:$0xf]  ;;  %524 = vmatmul.msk.bf16.vlgmr.msra.gmra.mxu0 %vm63_vm0, %v44_v8  ;;  %v578_v27 = vld [vmem:[#allocation2 + $0x68] sm:$0xf0] }
   0xc   :  { %v641_v26 = vor.u32 %v749_v24, %v640_v23  ;;  %v748_v28 = vld [vmem:[#allocation2 + $0xe4] sm:$0xf]  ;;  %v642_v29 = vld [vmem:[#allocation2 + $0xe8] sm:$0xf0]  ;;  %525 = vmatmul.msk.bf16.vlgmr.msra.gmra.mxu1 %vm63_vm0, %v44_v8  ;;  %321 = vmatpush.bf16.msrb.mxu0 %v589_v17  ;;  %v581_v30 = vor.u32 %v732_v25, %v578_v27  ;;  %v568_v31 = vld [vmem:[#allocation2 + $0x50] sm:$0xf] }
   0xd   :  { %v731_v32 = vld [vmem:[#allocation2 + $0x54] sm:$0xf0]  ;;  %v632_v33 = vld [vmem:[#allocation2 + $0xd0] sm:$0xf]  ;;  %334 = vmatpush.bf16.msrb.mxu1 %v653_v21  ;;  %v645_v34 = vor.u32 %v748_v28, %v642_v29  ;;  %v730_v36 = vld [vmem:[#allocation2 + $0x54] sm:$0xf] }
   0xe   :  { %v747_v35 = vld [vmem:[#allocation2 + $0xd4] sm:$0xf0]  ;;  %v570_v37 = vld [vmem:[#allocation2 + $0x58] sm:$0xf0]  ;;  %296 = vmatpush.bf16.msra.mxu2 %v577_v22  ;;  %v569_v38 = vor.u32 %v731_v32, %v568_v31  ;;  %v746_v40 = vld [vmem:[#allocation2 + $0xd4] sm:$0xf] }
   0xf   :  { %309 = vmatpush.bf16.msra.mxu3 %v641_v26  ;;  %v633_v39 = vor.u32 %v747_v35, %v632_v33  ;;  %v634_v41 = vld [vmem:[#allocation2 + $0xd8] sm:$0xf0]  ;;  %v560_v42 = vld [vmem:[#allocation2 + $0x40] sm:$0xf]  ;;  %v729_v43 = vld [vmem:[#allocation2 + $0x44] sm:$0xf0]  ;;  %v573_v46 = vor.u32 %v730_v36, %v570_v37 }
  0x10   :  { %v624_v44 = vld [vmem:[#allocation2 + $0xc0] sm:$0xf]  ;;  %v745_v45 = vld [vmem:[#allocation2 + $0xc4] sm:$0xf0]  ;;  %322 = vmatpush.bf16.msrb.mxu0 %v581_v30  ;;  %v637_v47 = vor.u32 %v746_v40, %v634_v41  ;;  %v728_v48 = vld [vmem:[#allocation2 + $0x44] sm:$0xf]  ;;  %v561_v50 = vor.u32 %v729_v43, %v560_v42 }
  0x11   :  { %335 = vmatpush.bf16.msrb.mxu1 %v645_v34  ;;  %v562_v49 = vld [vmem:[#allocation2 + $0x48] sm:$0xf0]  ;;  %v625_v51 = vor.u32 %v745_v45, %v624_v44  ;;  %v744_v52 = vld [vmem:[#allocation2 + $0xc4] sm:$0xf]  ;;  %v552_v54 = vld [vmem:[#allocation2 + $0x30] sm:$0xf] }
  0x12   :  { %297 = vmatpush.bf16.msra.mxu2 %v569_v38  ;;  %v626_v53 = vld [vmem:[#allocation2 + $0xc8] sm:$0xf0]  ;;  %v727_v55 = vld [vmem:[#allocation2 + $0x34] sm:$0xf0]  ;;  %v616_v56 = vld [vmem:[#allocation2 + $0xb0] sm:$0xf]  ;;  %v565_v58 = vor.u32 %v728_v48, %v562_v49 }
  0x13   :  { %310 = vmatpush.bf16.msra.mxu3 %v633_v39  ;;  %v743_v57 = vld [vmem:[#allocation2 + $0xb4] sm:$0xf0]  ;;  %v629_v59 = vor.u32 %v744_v52, %v626_v53  ;;  %v726_v60 = vld [vmem:[#allocation2 + $0x34] sm:$0xf]  ;;  %v554_v61 = vld [vmem:[#allocation2 + $0x38] sm:$0xf0]  ;;  %v553_v63 = vor.u32 %v727_v55, %v552_v54 }
  0x14   :  { %323 = vmatpush.bf16.msrb.mxu0 %v573_v46  ;;  %v742_v62 = vld [vmem:[#allocation2 + $0xb4] sm:$0xf]  ;;  %v617_v0 = vor.u32 %v743_v57, %v616_v56  ;;  %v618_v1 = vld [vmem:[#allocation2 + $0xb8] sm:$0xf0]  ;;  %v544_v2 = vld [vmem:[#allocation2 + $0x20] sm:$0xf]  ;;  %v557_v6 = vor.u32 %v726_v60, %v554_v61 }
  0x15   :  { %336 = vmatpush.bf16.msrb.mxu1 %v637_v47  ;;  %v725_v3 = vld [vmem:[#allocation2 + $0x24] sm:$0xf0]  ;;  %v608_v4 = vld [vmem:[#allocation2 + $0xa0] sm:$0xf]  ;;  %v621_v7 = vor.u32 %v742_v62, %v618_v1  ;;  %v724_v8 = vld [vmem:[#allocation2 + $0x24] sm:$0xf] }
  0x16   :  { %298 = vmatpush.bf16.msra.mxu2 %v561_v50  ;;  %v741_v5 = vld [vmem:[#allocation2 + $0xa4] sm:$0xf0]  ;;  %v546_v9 = vld [vmem:[#allocation2 + $0x28] sm:$0xf0]  ;;  %v545_v10 = vor.u32 %v725_v3, %v544_v2  ;;  %v740_v12 = vld [vmem:[#allocation2 + $0xa4] sm:$0xf] }
  0x17   :  { %311 = vmatpush.bf16.msra.mxu3 %v625_v51  ;;  %v609_v11 = vor.u32 %v741_v5, %v608_v4  ;;  %v610_v13 = vld [vmem:[#allocation2 + $0xa8] sm:$0xf0]  ;;  %v549_v14 = vor.u32 %v724_v8, %v546_v9  ;;  %v536_v16 = vld [vmem:[#allocation2 + $0x10] sm:$0xf]  ;;  %v723_v17 = vld [vmem:[#allocation2 + $0x14] sm:$0xf0] }
  0x18   :  { %324 = vmatpush.bf16.msrb.mxu0 %v565_v58  ;;  %v613_v15 = vor.u32 %v740_v12, %v610_v13  ;;  %v600_v18 = vld [vmem:[#allocation2 + $0x90] sm:$0xf]  ;;  %v537_v19 = vor.u32 %v723_v17, %v536_v16  ;;  %v739_v20 = vld [vmem:[#allocation2 + $0x94] sm:$0xf0]  ;;  %v722_v21 = vld [vmem:[#allocation2 + $0x14] sm:$0xf] }
  0x19   :  { %337 = vmatpush.bf16.msrb.mxu1 %v629_v59  ;;  %v538_v22 = vld [vmem:[#allocation2 + $0x18] sm:$0xf0]  ;;  %v601_v23 = vor.u32 %v739_v20, %v600_v18  ;;  %v738_v25 = vld [vmem:[#allocation2 + $0x94] sm:$0xf]  ;;  %v528_v28 = vld [vmem:[#allocation2] sm:$0xf] }
  0x1a   :  { %299 = vmatpush.bf16.msra.mxu2 %v553_v63  ;;  %v541_v24 = vor.u32 %v722_v21, %v538_v22  ;;  %v602_v26 = vld [vmem:[#allocation2 + $0x98] sm:$0xf0]  ;;  %v721_v29 = vld [vmem:[#allocation2 + $0x4] sm:$0xf0]  ;;  %v592_v30 = vld [vmem:[#allocation2 + $0x80] sm:$0xf] }
  0x1b   :  { %312 = vmatpush.bf16.msra.mxu3 %v617_v0  ;;  %v605_v27 = vor.u32 %v738_v25, %v602_v26  ;;  %v529_v31 = vor.u32 %v721_v29, %v528_v28  ;;  %v737_v32 = vld [vmem:[#allocation2 + $0x84] sm:$0xf0]  ;;  %v720_v33 = vld [vmem:[#allocation2 + $0x4] sm:$0xf]  ;;  %v530_v34 = vld [vmem:[#allocation2 + $0x8] sm:$0xf0] }
  0x1c   :  { %325 = vmatpush.bf16.msrb.mxu0 %v557_v6  ;;  %v593_v35 = vor.u32 %v737_v32, %v592_v30  ;;  %v533_v36 = vor.u32 %v720_v33, %v530_v34  ;;  %v736_v37 = vld [vmem:[#allocation2 + $0x84] sm:$0xf]  ;;  %v594_v38 = vld [vmem:[#allocation2 + $0x88] sm:$0xf0]  ;;  %v767_v40 = vld [vmem:[%s926_s5 + $0x78] sm:$0xff] }
  0x1d   :  { %338 = vmatpush.bf16.msrb.mxu1 %v621_v7  ;;  %v597_v39 = vor.u32 %v736_v37, %v594_v38  ;;  %v759_v41 = vld [vmem:[%s926_s5 + $0x38] sm:$0xff]  ;;  %v766_v42 = vld [vmem:[%s926_s5 + $0x70] sm:$0xff]  ;;  %v765_v44 = vld [vmem:[%s926_s5 + $0x68] sm:$0xff] }
  0x1e   :  { %300 = vmatpush.bf16.msra.mxu2 %v545_v10  ;;  %v758_v43 = vld [vmem:[%s926_s5 + $0x30] sm:$0xff]  ;;  %v757_v45 = vld [vmem:[%s926_s5 + $0x28] sm:$0xff]  ;;  %v764_v46 = vld [vmem:[%s926_s5 + $0x60] sm:$0xff] }
  0x1f   :  { %313 = vmatpush.bf16.msra.mxu3 %v609_v11  ;;  %v756_v47 = vld [vmem:[%s926_s5 + $0x20] sm:$0xff]  ;;  %v763_v48 = vld [vmem:[%s926_s5 + $0x58] sm:$0xff]  ;;  %v762_v50 = vld [vmem:[%s926_s5 + $0x50] sm:$0xff] }
  0x20   :  { %326 = vmatpush.bf16.msrb.mxu0 %v549_v14  ;;  %v47_v49 = vld [vmem:[%s923_s2] sm:$0x3]  ;;  %v755_v63 = vld [vmem:[%s926_s5 + $0x18] sm:$0xff]  ;;  %v761_v0 = vld [vmem:[%s926_s5 + $0x48] sm:$0xff] }
  0x21   :  { %339 = vmatpush.bf16.msrb.mxu1 %v613_v15  ;;  %v49_v51 = vperm.slane %v47_v49, 0  ;;  %v50_v52 = vperm.slane %v47_v49, 1  ;;  %v754_v1 = vld [vmem:[%s926_s5 + $0x10] sm:$0xff]  ;;  %v760_v2 = vld [vmem:[%s926_s5 + $0x40] sm:$0xff]  ;;  %v753_v3 = vld [vmem:[%s926_s5 + $0x8] sm:$0xff] }
  0x22   :  { %301 = vmatpush.bf16.msra.mxu2 %v537_v19  ;;  %v752_v4 = vld [vmem:[%s926_s5] sm:$0xff] }
  0x23   :  { %314 = vmatpush.bf16.msra.mxu3 %v601_v23  ;;  %v129_v5 = vld [vmem:[%s925_s4] sm:$0x3] }
  0x24   :  { %327 = vmatpush.bf16.msrb.mxu0 %v541_v24  ;;  %v132_v6 = vperm.slane %v129_v5, 1  ;;  %v131_v11 = vperm.slane %v129_v5, 0  ;;  %v771_v25 = vld [vmem:[%s927_s6] ss:$0 sm:$0xff] }
  0x25   :  { %340 = vmatpush.bf16.msrb.mxu1 %v605_v27 }
  0x26   :  { %302 = vmatpush.bf16.msra.mxu2 %v529_v31 }
  0x27   :  { %315 = vmatpush.bf16.msra.mxu3 %v593_v35 }
  0x28   :  { %328 = vmatpush.bf16.msrb.mxu0 %v533_v36 }
  0x29   :  { %341 = vmatpush.bf16.msrb.mxu1 %v597_v39 }
  0x2a   :  { %483 = vmatpush.bf16.msrb.mxu2 %v759_v41 }
  0x2b   :  { %496 = vmatpush.bf16.msrb.mxu3 %v767_v40 }
  0x2e   :  { %484 = vmatpush.bf16.msrb.mxu2 %v758_v43 }
  0x2f   :  { %497 = vmatpush.bf16.msrb.mxu3 %v766_v42 }
  0x32   :  { %485 = vmatpush.bf16.msrb.mxu2 %v757_v45 }
  0x33   :  { %498 = vmatpush.bf16.msrb.mxu3 %v765_v44 }
  0x36   :  { %486 = vmatpush.bf16.msrb.mxu2 %v756_v47 }
  0x37   :  { %499 = vmatpush.bf16.msrb.mxu3 %v764_v46 }
  0x3a   :  { %487 = vmatpush.bf16.msrb.mxu2 %v755_v63 }
  0x3b   :  { %500 = vmatpush.bf16.msrb.mxu3 %v763_v48 }
  0x3e   :  { %488 = vmatpush.bf16.msrb.mxu2 %v754_v1 }
  0x3f   :  { %501 = vmatpush.bf16.msrb.mxu3 %v762_v50 }
  0x42   :  { %489 = vmatpush.bf16.msrb.mxu2 %v753_v3 }
  0x43   :  { %502 = vmatpush.bf16.msrb.mxu3 %v761_v0 }
  0x46   :  { %490 = vmatpush.bf16.msrb.mxu2 %v752_v4 }
  0x47   :  { %503 = vmatpush.bf16.msrb.mxu3 %v760_v2 }
  0x88   :  { %v76_v53 = vpop.f32.mrf.mxu0 }
  0x89   :  { %v77_v54 = vadd.f32 %v76_v53, %v49_v51  ;;  %v89_v55 = vpop.f32.mrf.mxu1 }
  0x8a   :  { %v90_v56 = vadd.f32 %v89_v55, %v50_v52 }
  0x8b   :  { %v93_v57 = vmax.f32 %v77_v54, 0.0 }
  0x8c   :  { %v94_v58 = vmax.f32 %v90_v56, 0.0 }
  0x8d   :  { %v95_v59 = vpack.c.bf16 %v93_v57, %v93_v57 }
  0x8e   :  { %v96_v60 = vpack.c.bf16 %v94_v58, %v94_v58 }
  0x8f   :  { %303 = vmatmul.bf16.vlgmr.msra.gmra.mxu2 %v95_v59  ;;  %329 = vmatmul.bf16.vlgmr.msrb.gmra.mxu0 %v95_v59 }
  0x90   :  { %316 = vmatmul.bf16.vlgmr.msra.gmra.mxu3 %v96_v60  ;;  %342 = vmatmul.bf16.vlgmr.msrb.gmra.mxu1 %v96_v60  ;;  %v78_v61 = vpop.f32.mrf.mxu0 }
  0x91   :  { %v91_v62 = vpop.f32.mrf.mxu1 }
 0x10c   :  { %v330_v7 = vpop.f32.mrf.mxu0 }
 0x10d   :  { %v331_v8 = vadd.f32 %v330_v7, %v132_v6  ;;  %v343_v9 = vpop.f32.mrf.mxu1 }
 0x10f   :  { %v344_v10 = vadd.f32 %v343_v9, %v331_v8 }
 0x111   :  { %v348_v12 = vmax.f32 %v344_v10, 0.0 }
 0x112   :  { %v304_v13 = vpop.f32.mrf.mxu2 }
 0x113   :  { %v350_v14 = vpack.c.bf16 %v348_v12, %v348_v12  ;;  %v305_v15 = vadd.f32 %v304_v13, %v131_v11  ;;  %v317_v16 = vpop.f32.mrf.mxu3 }
 0x114   :  { %v332_v17 = vpop.f32.mrf.mxu0 }
 0x115   :  { %v318_v18 = vadd.f32 %v317_v16, %v305_v15  ;;  %v345_v19 = vpop.f32.mrf.mxu1  ;;  %504 = vmatmul.bf16.vlgmr.msrb.gmra.mxu3 %v350_v14 }
 0x117   :  { %v347_v20 = vmax.f32 %v318_v18, 0.0 }
 0x119   :  { %v349_v21 = vpack.c.bf16 %v347_v20, %v347_v20 }
 0x11a   :  { %v306_v22 = vpop.f32.mrf.mxu2 }
 0x11b   :  { %v319_v23 = vpop.f32.mrf.mxu3  ;;  %491 = vmatmul.bf16.vlgmr.msrb.gmra.mxu2 %v349_v21 }
 0x198   :  { %v505_v24 = vpop.f32.mrf.mxu3 }
 0x19e   :  { %v492_v26 = vpop.f32.mrf.mxu2 }
 0x19f   :  { %v493_v27 = vadd.f32 %v771_v25, %v492_v26 }
 0x1a0   :  { %v507_v28 = vpop.f32.mrf.mxu3 }
 0x1a1   :  { %v506_v29 = vadd.f32 %v505_v24, %v493_v27 }
 0x1a3   :  { %510 = vst.msk [vmem:[%s928_s7] sm:$0xff] %vm509_vm1, %v506_v29 }
 0x1a6   :  { %v494_v30 = vpop.f32.mrf.mxu2 }
 0x1a7   :  { %515 = vsyncpa [#allocation3], 1 }

</bundles_post_ra>
